<compile_context>
chip_gen: v7x
topology: tpu7x:2x2x1
jax: 0.10.0
libtpu: 0.0.40
codegen_flags: <defaults>
</compile_context>

<pallas_src>
import functools

import jax
import jax.numpy as jnp
from jax.experimental import pallas as pl
from jax.experimental.pallas import tpu as pltpu


def _mape_kernel(forecast_ref, target_ref, mask_ref, out_ref, *, B, T, nt_per):
    p = pl.program_id(0)   # parallel shard of time blocks (megacore on v7x)
    i = pl.program_id(1)   # batch blocks
    j = pl.program_id(2)   # time blocks within this shard

    bb, bt = out_ref.shape

    # Output block index depends only on `p`, so out_ref stays resident in
    # VMEM across the (i, j) reduction axes and serves as the accumulator.
    @pl.when((i == 0) & (j == 0))
    def _():
        out_ref[...] = jnp.zeros_like(out_ref)

    f = forecast_ref[...].astype(jnp.float32)
    tg = target_ref[...].astype(jnp.float32)
    m = mask_ref[...].astype(jnp.float32)

    # divide_no_nan: a/b with NaN and +Inf replaced by 0.  Exactly mirrors the
    # PyTorch reference (only `result != result` and `result == np.inf` are
    # zeroed; -inf intentionally propagates, as in the spec).
    w = m / tg
    w = jnp.where(jnp.isnan(w) | (w == jnp.inf), jnp.float32(0.0), w)
    vals = jnp.abs((f - tg) * w)

    # Mask out-of-bounds rows/cols (tail tiles and over-split time shards).
    row0 = i * bb
    col0 = (p * nt_per + j) * bt
    rows = jax.lax.broadcasted_iota(jnp.int32, (bb, bt), 0) + row0
    cols = jax.lax.broadcasted_iota(jnp.int32, (bb, bt), 1) + col0
    vals = jnp.where((rows < B) & (cols < T), vals, jnp.float32(0.0))

    out_ref[...] += vals


def _choose_tiles(B, T, batch_tile, time_tile, target_block_elems):
    # Batch tile: multiple of 8 (or the full dim if B < 8).
    bb = min(B, 128) if batch_tile is None else min(batch_tile, B)
    bb = max(8, (bb // 8) * 8) if B >= 8 else B
    # Time tile: multiple of 128 (or the full dim if T < 128), sized so a
    # block is ~target_block_elems elements (~1 MiB for f32 by default).
    bt = max(target_block_elems // bb, 128) if time_tile is None else time_tile
    bt = min(bt, T)
    bt = max(128, (bt // 128) * 128) if T >= 128 else T
    return bb, bt


def mape_loss(insample, freq, forecast, target, mask, *,
              batch_tile=None, time_tile=None, num_parallel=2,
              target_block_elems=256 * 1024):
    """Pallas MAPE loss. `insample` and `freq` are unused (as in the PyTorch module)."""
    del insample, freq
    B, T = forecast.shape
    bb, bt = _choose_tiles(B, T, batch_tile, time_tile, target_block_elems)

    nb = pl.cdiv(B, bb)                 # batch blocks
    nt = pl.cdiv(T, bt)                 # time blocks
    P = max(1, min(num_parallel, nt))   # parallel shards (<= 2 TensorCores)
    nt_per = pl.cdiv(nt, P)             # time blocks per shard

    kernel = functools.partial(_mape_kernel, B=B, T=T, nt_per=nt_per)

    def in_index(p, i, j):
        # Clamp over-split shards to a valid block; the over-read data is
        # zeroed by the in-kernel mask (col index >= T).
        return (i, jnp.minimum(p * nt_per + j, nt - 1))

    in_spec = pl.BlockSpec((bb, bt), in_index)

    partials = pl.pallas_call(
        kernel,
        out_shape=jax.ShapeDtypeStruct((P, bb, bt), jnp.float32),
        grid_spec=pltpu.PrefetchScalarGridSpec(
            num_scalar_prefetch=0,
            grid=(P, nb, nt_per),
            in_specs=[in_spec, in_spec, in_spec],
            out_specs=pl.BlockSpec((None, bb, bt), lambda p, i, j: (p, 0, 0)),
        ),
        compiler_params=pltpu.CompilerParams(
            dimension_semantics=("parallel", "arbitrary", "arbitrary"),
        ),
    )(forecast, target, mask)

    # Single cross-lane reduce + mean, done once outside the kernel.
    return jnp.sum(partials) / jnp.float32(B * T)


def mape_loss_ref(forecast, target, mask):
    w = mask / target
    w = jnp.where(jnp.isnan(w) | (w == jnp.inf), 0.0, w)
    return jnp.mean(jnp.abs((forecast - target) * w))


if __name__ == "__main__":
    key = jax.random.PRNGKey(0)
    k1, k2, k3 = jax.random.split(key, 3)

    # Deliberately NOT multiples of (8, 128): exercises the cdiv grid,
    # tail-tile masking, and the parallel time split.
    B, T = 12, 300
    forecast = jax.random.normal(k1, (B, T), dtype=jnp.float32)
    target = jax.random.normal(k2, (B, T), dtype=jnp.float32) + 1.0
    mask = (jax.random.uniform(k3, (B, T)) > 0.2).astype(jnp.float32)
    # Zero out some targets to exercise the divide_no_nan path.
    target = target.at[:, ::17].set(0.0)

    insample = jnp.zeros((B, 32), dtype=jnp.float32)  # unused by the loss
    freq = 1                                          # unused by the loss

    loss = jax.block_until_ready(mape_loss(insample, freq, forecast, target, mask))
    ref = mape_loss_ref(forecast, target, mask)
    assert jnp.allclose(loss, ref, rtol=1e-5, atol=1e-6), (loss, ref)
    print("KERNEL_OK")
</pallas_src>

<mosaic_0001>
module attributes {stable_mosaic.version = 11 : i64} {
  func.func @_mape_kernel(%arg0: i32, %arg1: i32, %arg2: i32, %arg3: memref<8x256xf32, #tpu.memory_space<vmem>>, %arg4: memref<8x256xf32, #tpu.memory_space<vmem>>, %arg5: memref<8x256xf32, #tpu.memory_space<vmem>>, %arg6: memref<1x8x256xf32, #tpu.memory_space<vmem>>) attributes {dimension_semantics = [#tpu.dimension_semantics<parallel>, #tpu.dimension_semantics<arbitrary>, #tpu.dimension_semantics<arbitrary>], iteration_bounds = array<i64: 2, 2, 1>, scalar_prefetch = 0 : i64, scratch_operands = 0 : i64, tpu.core_type = #tpu.core_type<tc>, window_params = [{transform_indices = @transform_0, window_bounds = array<i64: 8, 256>}, {transform_indices = @transform_1, window_bounds = array<i64: 8, 256>}, {transform_indices = @transform_2, window_bounds = array<i64: 8, 256>}, {transform_indices = @transform_3, window_bounds = array<i64: 1, 8, 256>}]} {
    %c0_i32 = arith.constant 0 : i32
    %0 = arith.cmpi eq, %arg1, %c0_i32 : i32
    %c0_i32_0 = arith.constant 0 : i32
    %1 = arith.cmpi eq, %arg2, %c0_i32_0 : i32
    %2 = arith.andi %0, %1 : i1
    %3 = arith.extui %2 : i1 to i32
    %c0_i32_1 = arith.constant 0 : i32
    %4 = arith.cmpi ne, %3, %c0_i32_1 : i32
    scf.if %4 {
      %cst_15 = arith.constant 0.000000e+00 : f32
      %41 = vector.broadcast %cst_15 : f32 to vector<8x256xf32>
      %c0_16 = arith.constant 0 : index
      %c0_17 = arith.constant 0 : index
      %c0_18 = arith.constant 0 : index
      %42 = vector.load %arg6[%c0_16, %c0_17, %c0_18] : memref<1x8x256xf32, #tpu.memory_space<vmem>>, vector<1x8x256xf32>
      %43 = vector.shape_cast %42 : vector<1x8x256xf32> to vector<8x256xf32>
      %44 = vector.shape_cast %41 : vector<8x256xf32> to vector<1x8x256xf32>
      tpu.vector_store %arg6[%c0_16, %c0_17, %c0_18], %44 {strides = array<i32>} : memref<1x8x256xf32, #tpu.memory_space<vmem>>, vector<1x8x256xf32>,
    } else {
    }
    %c0 = arith.constant 0 : index
    %c0_2 = arith.constant 0 : index
    %5 = vector.load %arg3[%c0, %c0_2] : memref<8x256xf32, #tpu.memory_space<vmem>>, vector<8x256xf32>
    %c0_3 = arith.constant 0 : index
    %c0_4 = arith.constant 0 : index
    %6 = vector.load %arg4[%c0_3, %c0_4] : memref<8x256xf32, #tpu.memory_space<vmem>>, vector<8x256xf32>
    %c0_5 = arith.constant 0 : index
    %c0_6 = arith.constant 0 : index
    %7 = vector.load %arg5[%c0_5, %c0_6] : memref<8x256xf32, #tpu.memory_space<vmem>>, vector<8x256xf32>
    %8 = arith.divf %7, %6 : vector<8x256xf32>
    %9 = arith.cmpf one, %8, %8 : vector<8x256xf32>
    %cst = arith.constant 0x7F800000 : f32
    %10 = vector.broadcast %cst : f32 to vector<8x256xf32>
    %11 = arith.cmpf oeq, %8, %10 : vector<8x256xf32>
    %12 = arith.ori %9, %11 : vector<8x256xi1>
    %cst_7 = arith.constant 0.000000e+00 : f32
    %13 = vector.broadcast %cst_7 : f32 to vector<8x256xf32>
    %14 = arith.select %12, %13, %8 : vector<8x256xi1>, vector<8x256xf32>
    %15 = arith.subf %5, %6 : vector<8x256xf32>
    %16 = arith.mulf %15, %14 : vector<8x256xf32>
    %17 = math.absf %16 : vector<8x256xf32>
    %c8_i32 = arith.constant 8 : i32
    %18 = arith.muli %arg1, %c8_i32 : i32
    %c1_i32 = arith.constant 1 : i32
    %19 = arith.muli %arg0, %c1_i32 : i32
    %20 = arith.addi %19, %arg2 : i32
    %c256_i32 = arith.constant 256 : i32
    %21 = arith.muli %20, %c256_i32 : i32
    %22 = tpu.iota {dimensions = array<i32: 0>} : vector<8x256xi32>
    %23 = vector.broadcast %18 : i32 to vector<8x256xi32>
    %24 = arith.addi %22, %23 : vector<8x256xi32>
    %25 = tpu.iota {dimensions = array<i32: 1>} : vector<8x256xi32>
    %26 = vector.broadcast %21 : i32 to vector<8x256xi32>
    %27 = arith.addi %25, %26 : vector<8x256xi32>
    %c12_i32 = arith.constant 12 : i32
    %28 = vector.broadcast %c12_i32 : i32 to vector<8x256xi32>
    %29 = arith.cmpi slt, %24, %28 : vector<8x256xi32>
    %c300_i32 = arith.constant 300 : i32
    %30 = vector.broadcast %c300_i32 : i32 to vector<8x256xi32>
    %31 = arith.cmpi slt, %27, %30 : vector<8x256xi32>
    %32 = arith.andi %29, %31 : vector<8x256xi1>
    %cst_8 = arith.constant 0.000000e+00 : f32
    %33 = vector.broadcast %cst_8 : f32 to vector<8x256xf32>
    %34 = arith.select %32, %17, %33 : vector<8x256xi1>, vector<8x256xf32>
    %c0_9 = arith.constant 0 : index
    %c0_10 = arith.constant 0 : index
    %c0_11 = arith.constant 0 : index
    %35 = vector.load %arg6[%c0_9, %c0_10, %c0_11] : memref<1x8x256xf32, #tpu.memory_space<vmem>>, vector<1x8x256xf32>
    %36 = vector.shape_cast %35 : vector<1x8x256xf32> to vector<8x256xf32>
    %37 = arith.addf %36, %34 : vector<8x256xf32>
    %c0_12 = arith.constant 0 : index
    %c0_13 = arith.constant 0 : index
    %c0_14 = arith.constant 0 : index
    %38 = vector.load %arg6[%c0_12, %c0_13, %c0_14] : memref<1x8x256xf32, #tpu.memory_space<vmem>>, vector<1x8x256xf32>
    %39 = vector.shape_cast %38 : vector<1x8x256xf32> to vector<8x256xf32>
    %40 = vector.shape_cast %37 : vector<8x256xf32> to vector<1x8x256xf32>
    tpu.vector_store %arg6[%c0_12, %c0_13, %c0_14], %40 {strides = array<i32>} : memref<1x8x256xf32, #tpu.memory_space<vmem>>, vector<1x8x256xf32>,
    return
  }
  func.func @transform_0(%arg0: i32, %arg1: i32, %arg2: i32) -> (i32, i32) {
    %c1_i32 = arith.constant 1 : i32
    %0 = arith.muli %arg0, %c1_i32 : i32
    %1 = arith.addi %0, %arg2 : i32
    %c1_i32_0 = arith.constant 1 : i32
    %2 = arith.minsi %1, %c1_i32_0 : i32
    %c0_i32 = arith.constant 0 : i32
    return %arg1, %2 : i32, i32
  }
  func.func @transform_1(%arg0: i32, %arg1: i32, %arg2: i32) -> (i32, i32) {
    %c1_i32 = arith.constant 1 : i32
    %0 = arith.muli %arg0, %c1_i32 : i32
    %1 = arith.addi %0, %arg2 : i32
    %c1_i32_0 = arith.constant 1 : i32
    %2 = arith.minsi %1, %c1_i32_0 : i32
    %c0_i32 = arith.constant 0 : i32
    return %arg1, %2 : i32, i32
  }
  func.func @transform_2(%arg0: i32, %arg1: i32, %arg2: i32) -> (i32, i32) {
    %c1_i32 = arith.constant 1 : i32
    %0 = arith.muli %arg0, %c1_i32 : i32
    %1 = arith.addi %0, %arg2 : i32
    %c1_i32_0 = arith.constant 1 : i32
    %2 = arith.minsi %1, %c1_i32_0 : i32
    %c0_i32 = arith.constant 0 : i32
    return %arg1, %2 : i32, i32
  }
  func.func @transform_3(%arg0: i32, %arg1: i32, %arg2: i32) -> (i32, i32, i32) {
    %c0_i32 = arith.constant 0 : i32
    %c0_i32_0 = arith.constant 0 : i32
    %c0_i32_1 = arith.constant 0 : i32
    return %arg0, %c0_i32, %c0_i32_0 : i32, i32, i32
  }
}

</mosaic_0001>

<bundles_post_ra>
// kernel: tpu_custom_call.1
= control target key start
LH: loop header
LB: loop body
LE: loop exit
PB: predicated region body
PF: predicated region fallthrough
CT: control target
= control target key end

     0   :  { %s1284_s0 = inlined_call_operand.hbm [shape: f32[12,300], index: 0, kind: input, shape index: {}]   ;;  %s1285_s1 = inlined_call_operand.hbm [shape: f32[12,300], index: 1, kind: input, shape index: {}]   ;;  %s1286_s2 = inlined_call_operand.hbm [shape: f32[12,300], index: 2, kind: input, shape index: {}]   ;;  %s1287_s3 = inlined_call_operand.hbm [shape: f32[2,8,256], index: 3, kind: output, shape index: {}]  }
   0x1   :  { %1298 = sst [smem:[#allocation21_spill]] %s1287_s3 }
   0x2   :  { %8 = vsyncpa [#allocation3], 0 }
   0x3   :  { %10 = vsyncpa [#allocation3 + $0x1], 0 }
   0x4   :  { %11 = vsyncpa [#allocation6], 0 }
   0x5   :  { %13 = vsyncpa [#allocation6 + $0x1], 0 }
   0x6   :  { %14 = vsyncpa [#allocation4], 0 }
   0x7   :  { %16 = vsyncpa [#allocation4 + $0x1], 0  ;;  %s952_s12 = smov 0   ;;  %s954_s13 = smov 0  }
   0x8   :  { %s956_s14 = smov 0   ;;  %s958_s15 = smov 0  }
   0x9   :  { %s960_s16 = smov 0   ;;  %s962_s17 = smov 0  }
   0xa   :  { %s964_s18 = smov 0   ;;  %s966_s19 = smov 0  }
   0xb   :  { %s968_s20 = smov 0   ;;  %s970_s21 = smov 0  }
   0xc   :  { %s972_s22 = smov 0  }
   0xd LB: > { %1299 = sst [smem:[#allocation12_spill]] %s885_s12  ;;  %s1006_s23 = sadd.s32 4294967295, %s925_s22   ;;  %s925_s22 = sphi %s972_s22, %s22_s22   ;;  %s921_s21 = sphi %s970_s21, %s1323_s21   ;;  %s917_s20 = sphi %s968_s20, %s1330_s20   ;;  %s913_s19 = sphi %s966_s19, %s1321_s19   ;;  %s909_s18 = sphi %s964_s18, %s1329_s18   ;;  %s905_s17 = sphi %s962_s17, %s1328_s17   ;;  %s901_s16 = sphi %s960_s16, %s1327_s16   ;;  %s897_s15 = sphi %s958_s15, %s1326_s15   ;;  %s893_s14 = sphi %s956_s14, %s1319_s14   ;;  %s889_s13 = sphi %s954_s13, %s1325_s13   ;;  %s885_s12 = sphi %s952_s12, %s1324_s12  }
   0xe   : > { %1300 = sst [smem:[#allocation13_spill]] %s893_s14  ;;  %s570_s24 = sadd.s32 4294967294, %s925_s22  }
   0xf   : > { %1301 = sst [smem:[#allocation14_spill]] %s921_s21  ;;  %s37_s25 = sadd.s32 1, %s917_s20 }
  0x10   : > { %s41_s26 = sadd.s32 1, %s921_s21  ;;  %p39_p0 = scmp.ge.s32.totalorder %s37_s25, 2 }
  0x11   : > { %p46_p1 = scmp.lt.s32.totalorder %s921_s21, 1  ;;  %s56_s27 = sadd.s32 1, %s905_s17 }
  0x12   : > { %p63_p2 = scmp.ne.s32.totalorder %s905_s17, %s901_s16  ;;  %s1332_s25 = smov (%p39_p0, %s37_s25), 0 }
  0x13   : > { %1302 = sst [smem:[#allocation15_spill]] %s1332_s25  ;;  %s1334_s26 = smov (!%p39_p0, %s41_s26), %s921_s21 }
  0x14   : > { %s1019_s28 = scalar_select %p46_p1, %s921_s21, 1 }
  0x15   : > { %p43_p3 = scmp.ge.s32.totalorder %s1334_s26, 2  ;;  %s51_s29 = ssub.s32 %s917_s20, %s1332_s25 }
  0x16   : > { %p64_p4 = scmp.eq.s32.totalorder %s925_s22, 0  ;;  %p69_p5 = scmp.ne.s32.totalorder %s901_s16, %s897_s15 }
  0x17   : > { %s1336_s26 = smov (%p43_p3, %s1334_s26), 0  ;;  %p70_p7 = scmp.eq.s32.totalorder %s1006_s23, 0 }
  0x18   : > { %1303 = sst [smem:[#allocation16_spill]] %s1336_s26  ;;  %p1027_p6 = por %p64_p4, %p63_p2 }
  0x19   : > { %p49_p8 = scmp.lt.s32.totalorder %s1336_s26, 1  ;;  %s147_s4 = ssub.s32 %s921_s21, %s1336_s26 }
  0x1a   : > { %p1035_p9 = por %p70_p7, %p69_p5  ;;  %p148_p10 = scmp.eq.s32.totalorder %s147_s4, 0 }
  0x1b   : > { %s50_s6 = scalar_select %p49_p8, %s1336_s26, 1 }
  0x1c   : > { %s150_s7 = sadd.s32 1, %s893_s14  ;;  %p160_p11 = scmp.ne.s32.totalorder %s893_s14, %s889_s13 }
  0x1d   : > { %s52_s8 = ssub.s32 %s1019_s28, %s50_s6  ;;  %p161_p12 = scmp.eq.s32.totalorder %s1006_s23, 3 }
  0x1e   : > { %s53_s9 = sor.u32 %s52_s8, %s51_s29  ;;  %p166_p13 = scmp.ne.s32.totalorder %s889_s13, %s885_s12 }
  0x1f   : > { %p54_p0 = scmp.eq.s32.totalorder %s53_s9, 0  ;;  %p1047_p1 = por %p161_p12, %p160_p11 }
  0x20   : > { %s1052_s11 = scalar_select %p148_p10, %s893_s14, %s150_s7  }
  0x21   : > { %s1306_s10 = scalar_select %p1047_p1, 1, 0 }
  0x22   : > { %1308 = sst [smem:[#allocation18_spill]] %s1052_s11  ;;  %p167_p2 = scmp.eq.s32.totalorder %s570_s24, 3 }
  0x23   : > { %1307 = sst [smem:[#allocation17_spill]] %s1306_s10  ;;  %p572_p4 = scmp.ge.s32.totalorder %s925_s22, 4 }
  0x24   : > { %s1055_s15 = scalar_select %p54_p0, %s905_s17, %s56_s27  }
  0x25   : > { %p1059_p3 = por %p167_p2, %p166_p13  ;;  %183 = sbr.rel (%p572_p4) target bundleno = 152 (0x98), region = 16 }
  0x26   : > { %1309 = sst [smem:[#allocation19_spill]] %s1055_s15 }
  0x27   : > { %s1310_s4 = scalar_select %p1059_p3, 1, 0 }
  0x29   : > { %1311 = sst [smem:[#allocation20_spill]] %s1310_s4 }
  0x2c   : > { %186 = sbr.rel (!%p1027_p6) target bundleno = 80 (0x50), region = 20  ;;  %s187_s29 = sand.u32 (%p1027_p6), 1, %s905_s17  }
  0x2d   : > { %s574_s6 = sshll.u32 (%p1027_p6), %s1019_s28, 1  ;;  %s573_s7 = sshll.u32 (%p1027_p6), %s187_s29, 4 }
  0x2e   : > { %s196_s8 = ssub.s32 (%p1027_p6), 3, %s574_s6  ;;  %s1071_s9 = scalar_lea.sflag (%p1027_p6), [#allocation3], %s187_s29 }
  0x2f   : > { %p197_p5 = scmp.lt.s32.totalorder (%p1027_p6), %s196_s8, 2  ;;  %s191_s26 = scalar_lea.vmem (%p1027_p6), [#allocation2], %s573_s7 }
  0x33   : > { %s1338_s8 = smov (!%p197_p5, %s196_s8), 2 }
  0x34   : > { %s1068_s27 = sshll.u32 %s1338_s8, 7 }
  0x35   : > { %s201_s24 = ssub.s32 256, %s1068_s27 }
  0x36   : > { %202 = vsyncadd %s1071_s9, %s201_s24  ;;  %s609_s25 = smul.u32 3, %s917_s20  ;;  %p576_p7 = scmp.ne.s32.totalorder %s1068_s27, 0 }
  0x37   : > { %s210_s21 = sshll.u32 %s191_s26, 4  ;;  %s719_s12 = scalar_lea.hbm %s1284_s0, 768  ;;  %s1076_s21 = int_to_ptr.vmem [resolvable:$true] %s210_s21 }
  0x38   : > { %s205_s15 = sadd.s32 %s609_s25, %s574_s6 }
  0x39   : > { %s577_s11 = sshll.u32 %s205_s15, 7 }
  0x3a   : > { %s207_s4 = scalar_lea.hbm %s1284_s0, %s577_s11 }
  0x3b   : > { %s715_s29 = scalar_lea.hbm %s207_s4, %s1068_s27  ;;  %p720_p12 = scmp.lt.u32.totalorder %s207_s4, %s1284_s0 }
  0x3c   : > { %p716_p8 = scmp.ne.s32.totalorder %s207_s4, %s715_s29  ;;  %p721_p13 = scmp.lt.u32.totalorder %s719_s12, %s715_s29 }
  0x3d   : > { %p723_p2 = scmp.lt.u32.totalorder %s715_s29, %s207_s4 }
  0x3e   : > { %p717_p10 = pnand %p716_p8, %p576_p7  ;;  %p722_p0 = por %p721_p13, %p720_p12 }
  0x40   : > { %p718_p11 = pneg %p717_p10  ;;  %p724_p4 = por %p723_p2, %p722_p0 }
  0x42   : > { %p725_p5 = pnand %p724_p4, %p718_p11 }
  0x44   : > { %728 = shalt.err (!%p725_p5)
}
  0x45   : > { %s729_s14 = scalar_lea.vmem %s1076_s21, %s1068_s27  ;;  %s927_s25 = smov [#allocation2]  }
  0x46   : > { %p730_p8 = scmp.ne.s32.totalorder %s1076_s21, %s729_s14  ;;  %s733_s26 = sshll.u32 %s927_s25, 4  ;;  %s734_s26 = int_to_ptr.vmem [resolvable:$false] %s733_s26 }
  0x47   : > { %s735_s3 = scalar_lea.vmem %s734_s26, 512  ;;  %p736_p1 = scmp.lt.s32.totalorder %s1076_s21, %s734_s26 }
  0x48   : > { %p731_p10 = pnand %p730_p8, %p576_p7  ;;  %p737_p12 = scmp.lt.s32.totalorder %s735_s3, %s729_s14 }
  0x4a   : > { %p732_p3 = pneg %p731_p10  ;;  %p738_p13 = por %p737_p12, %p736_p1 }
  0x4c   : > { %p739_p0 = pnand %p738_p13, %p732_p3 }
  0x4e   : > { %742 = shalt.err (!%p739_p0)
}
  0x4f   : > { %213 = dma.hbm_to_vmem [thread:$0]  (%p576_p7), %s207_s4, %s1068_s27, %s1076_s21, %s1071_s9  }
  0x50 PF: > { %216 = sbr.rel (!%p1027_p6) target bundleno = 116 (0x74), region = 24  ;;  %s217_s12 = sand.u32 (%p1027_p6), 1, %s925_s22  }
  0x51   : > { %s219_s10 = sand.u32 (%p1027_p6), 1, %s905_s17   ;;  %s581_s15 = sshll.u32 (%p1027_p6), %s1019_s28, 1 }
  0x52   : > { %s580_s11 = sshll.u32 (%p1027_p6), %s219_s10, 4  ;;  %s226_s6 = ssub.s32 (%p1027_p6), 3, %s581_s15 }
  0x53   : > { %p227_p1 = scmp.lt.s32.totalorder (%p1027_p6), %s226_s6, 2  ;;  %s1109_s7 = scalar_lea.sflag (%p1027_p6), [#allocation6], %s217_s12 }
  0x54   : > { %s221_s21 = scalar_lea.vmem (%p1027_p6), [#allocation5], %s580_s11 }
  0x57   : > { %s1340_s6 = smov (!%p227_p1, %s226_s6), 2 }
  0x58   : > { %s1106_s8 = sshll.u32 %s1340_s6, 7 }
  0x59   : > { %s231_s29 = ssub.s32 256, %s1106_s8 }
  0x5a   : > { %232 = vsyncadd %s1109_s7, %s231_s29  ;;  %s610_s4 = smul.u32 3, %s917_s20  ;;  %p583_p3 = scmp.ne.s32.totalorder %s1106_s8, 0 }
  0x5b   : > { %s240_s27 = sshll.u32 %s221_s21, 4  ;;  %s747_s11 = scalar_lea.hbm %s1285_s1, 768  ;;  %s1114_s27 = int_to_ptr.vmem [resolvable:$true] %s240_s27 }
  0x5c   : > { %s235_s9 = sadd.s32 %s610_s4, %s581_s15 }
  0x5d   : > { %s584_s24 = sshll.u32 %s235_s9, 7 }
  0x5e   : > { %s237_s26 = scalar_lea.hbm %s1285_s1, %s584_s24 }
  0x5f   : > { %s743_s3 = scalar_lea.hbm %s237_s26, %s1106_s8  ;;  %p748_p4 = scmp.lt.u32.totalorder %s237_s26, %s1285_s1 }
  0x60   : > { %p744_p7 = scmp.ne.s32.totalorder %s237_s26, %s743_s3  ;;  %p749_p5 = scmp.lt.u32.totalorder %s747_s11, %s743_s3 }
  0x61   : > { %p751_p10 = scmp.lt.u32.totalorder %s743_s3, %s237_s26 }
  0x62   : > { %p745_p11 = pnand %p744_p7, %p583_p3  ;;  %p750_p8 = por %p749_p5, %p748_p4 }
  0x64   : > { %p746_p2 = pneg %p745_p11  ;;  %p752_p12 = por %p751_p10, %p750_p8 }
  0x66   : > { %p753_p13 = pnand %p752_p12, %p746_p2 }
  0x68   : > { %756 = shalt.err (!%p753_p13)
}
  0x69   : > { %s757_s15 = scalar_lea.vmem %s1114_s27, %s1106_s8  ;;  %s928_s21 = smov [#allocation5]  }
  0x6a   : > { %p758_p0 = scmp.ne.s32.totalorder %s1114_s27, %s757_s15  ;;  %s761_s4 = sshll.u32 %s928_s21, 4  ;;  %s762_s4 = int_to_ptr.vmem [resolvable:$false] %s761_s4 }
  0x6b   : > { %s763_s9 = scalar_lea.vmem %s762_s4, 512  ;;  %p764_p11 = scmp.lt.s32.totalorder %s1114_s27, %s762_s4 }
  0x6c   : > { %p759_p1 = pnand %p758_p0, %p583_p3  ;;  %p765_p4 = scmp.lt.s32.totalorder %s763_s9, %s757_s15 }
  0x6e   : > { %p760_p7 = pneg %p759_p1  ;;  %p766_p5 = por %p765_p4, %p764_p11 }
  0x70   : > { %p767_p8 = pnand %p766_p5, %p760_p7 }
  0x72   : > { %770 = shalt.err (!%p767_p8)
}
  0x73   : > { %243 = dma.hbm_to_vmem [thread:$0]  (%p583_p3), %s237_s26, %s1106_s8, %s1114_s27, %s1109_s7  }
  0x74 PF: > { %246 = sbr.rel (!%p1027_p6) target bundleno = 152 (0x98), region = 28  ;;  %s247_s24 = sand.u32 (%p1027_p6), 1, %s925_s22  }
  0x75   : > { %s249_s14 = sand.u32 (%p1027_p6), 1, %s905_s17   ;;  %s588_s3 = sshll.u32 (%p1027_p6), %s1019_s28, 1 }
  0x76   : > { %s587_s25 = sshll.u32 (%p1027_p6), %s249_s14, 4  ;;  %s256_s12 = ssub.s32 (%p1027_p6), 3, %s588_s3 }
  0x77   : > { %p257_p2 = scmp.lt.s32.totalorder (%p1027_p6), %s256_s12, 2  ;;  %s1147_s6 = scalar_lea.sflag (%p1027_p6), [#allocation6], %s247_s24 }
  0x78   : > { %s251_s8 = scalar_lea.vmem (%p1027_p6), [#allocation7], %s587_s25 }
  0x7b   : > { %s1342_s12 = smov (!%p257_p2, %s256_s12), 2 }
  0x7c   : > { %s1144_s10 = sshll.u32 %s1342_s12, 7 }
  0x7d   : > { %s261_s11 = ssub.s32 256, %s1144_s10 }
  0x7e   : > { %262 = vsyncadd %s1147_s6, %s261_s11  ;;  %s611_s30 = smul.u32 3, %s917_s20  ;;  %p590_p6 = scmp.ne.s32.totalorder %s1144_s10, 0 }
  0x7f   : > { %s270_s7 = sshll.u32 %s251_s8, 4  ;;  %s775_s24 = scalar_lea.hbm %s1286_s2, 768  ;;  %s1152_s7 = int_to_ptr.vmem [resolvable:$true] %s270_s7 }
  0x80   : > { %s265_s28 = sadd.s32 %s611_s30, %s588_s3 }
  0x81   : > { %s591_s27 = sshll.u32 %s265_s28, 7 }
  0x82   : > { %s267_s15 = scalar_lea.hbm %s1286_s2, %s591_s27 }
  0x83   : > { %s771_s21 = scalar_lea.hbm %s267_s15, %s1144_s10  ;;  %p776_p13 = scmp.lt.u32.totalorder %s267_s15, %s1286_s2 }
  0x84   : > { %p772_p3 = scmp.ne.s32.totalorder %s267_s15, %s771_s21  ;;  %p777_p0 = scmp.lt.u32.totalorder %s775_s24, %s771_s21 }
  0x85   : > { %p779_p7 = scmp.lt.u32.totalorder %s771_s21, %s267_s15 }
  0x86   : > { %p773_p10 = pnand %p772_p3, %p590_p6  ;;  %p778_p1 = por %p777_p0, %p776_p13 }
  0x88   : > { %p774_p12 = pneg %p773_p10  ;;  %p780_p11 = por %p779_p7, %p778_p1 }
  0x8a   : > { %p781_p4 = pnand %p780_p11, %p774_p12 }
  0x8c   : > { %784 = shalt.err (!%p781_p4)
}
  0x8d   : > { %s785_s3 = scalar_lea.vmem %s1152_s7, %s1144_s10  ;;  %s929_s12 = smov [#allocation7]  }
  0x8e   : > { %p786_p5 = scmp.ne.s32.totalorder %s1152_s7, %s785_s3  ;;  %s789_s11 = sshll.u32 %s929_s12, 4  ;;  %s790_s11 = int_to_ptr.vmem [resolvable:$false] %s789_s11 }
  0x8f   : > { %s791_s8 = scalar_lea.vmem %s790_s11, 512  ;;  %p792_p3 = scmp.lt.s32.totalorder %s1152_s7, %s790_s11 }
  0x90   : > { %p787_p8 = pnand %p786_p5, %p590_p6  ;;  %p793_p10 = scmp.lt.s32.totalorder %s791_s8, %s785_s3 }
  0x92   : > { %p788_p2 = pneg %p787_p8  ;;  %p794_p13 = por %p793_p10, %p792_p3 }
  0x94   : > { %p795_p0 = pnand %p794_p13, %p788_p2 }
  0x96   : > { %798 = shalt.err (!%p795_p0)
}
  0x97   : > { %273 = dma.hbm_to_vmem [thread:$0]  (%p590_p6), %s267_s15, %s1144_s10, %s1152_s7, %s1147_s6  }
  0x98 PF: > { %p594_p12 = scmp.ge.s32.totalorder %s925_s22, 1  ;;  %p275_p1 = scmp.lt.s32.totalorder %s925_s22, 5 }
  0x9a   : > { %p276_p7 = pnand %p594_p12, %p275_p1 }
  0x9b   : > { %s281_s30 = sand.u32 (!%p276_p7), 1, %s901_s16  }
  0x9c   : > { %279 = sbr.rel (%p276_p7) target bundleno = 215 (0xd7), region = 32  ;;  %s1180_s28 = sshll.u32 (!%p276_p7), %s281_s30, 4 }
  0x9d   : > { %s282_s27 = scalar_lea.sflag (!%p276_p7), [#allocation3], %s281_s30  ;;  %s285_s26 = scalar_lea.vmem (!%p276_p7), [#allocation2], %s1180_s28 }
  0xa3   : > { %872 = dma.done.wait (%p1035_p9), %s282_s27, 256  }
  0xa4   : > { %874 = vsyncadd (%p1035_p9), %s282_s27, 4294967040  ;;  %s290_s10 = sand.u32 1, %s1006_s23   ;;  %s294_s7 = scalar_lea.vmem [#allocation5], %s1180_s28 }
  0xa5   : > { %s291_s6 = scalar_lea.sflag [#allocation6], %s290_s10 }
  0xa6   : > { %876 = dma.done.wait (%p1035_p9), %s291_s6, 512  }
  0xa7   : > { %878 = vsyncadd (%p1035_p9), %s291_s6, 4294966784  ;;  %s333_s29 = sand.u32 1, %s889_s13   ;;  %p360_p6 = scmp.eq.s32.totalorder %s909_s18, 0 }
  0xa8   : > { %s598_s15 = sshll.u32 %s333_s29, 4  ;;  %s303_s21 = scalar_lea.vmem [#allocation7], %s1180_s28  ;;  %v930_v0 = vmov (%p360_p6), 0.0  }
  0xa9   : > { %s1198_s4 = scalar_lea.vmem [#allocation8], %s598_s15  ;;  %365 = sbr.rel (!%p360_p6) target bundleno = 176 (0xb0), region = 48 }
  0xaa   : > { %366 = vst [vmem:[%s1198_s4] sm:$0xff] (%p360_p6), %v930_v0  ;;  %367 = vst [vmem:[%s1198_s4 + $0x8] sm:$0xff] (%p360_p6), %v930_v0 }
  0xb0 PF: > { %v370_v1 = vld [vmem:[%s294_s7] sm:$0xff]  ;;  %v395_v2 = vlaneseq  ;;  %v371_v3 = vld [vmem:[%s294_s7 + $0x8] sm:$0xff]  ;;  %s600_s23 = sshll.u32 %s909_s18, 3  ;;  %s601_s5 = sshll.u32 %s913_s19, 8 }
  0xb1   : > { %711 = vrcp.f32 %v370_v1  ;;  %v397_v6 = vstv %s600_s23  ;;  %v402_v7 = vstv %s601_s5  ;;  %v372_v8 = vld [vmem:[%s303_s21] sm:$0xff]  ;;  %v373_v14 = vld [vmem:[%s303_s21 + $0x8] sm:$0xff]  ;;  %s1312_s18 = sld [smem:[#allocation17_spill]]  ;;  %s433_s9 = sshll.u32 %s1198_s4, 4  ;;  %s1221_s9 = int_to_ptr.vmem [resolvable:$true] %s433_s9 }
  0xb2   : > { %713 = vrcp.f32 %v371_v3  ;;  %v400_v4 = vand.u32 127, %v395_v2  ;;  %v396_v5 = vshrl.u32 %v395_v2, 7  ;;  %v368_v10 = vld [vmem:[%s285_s26] sm:$0xff]  ;;  %v369_v16 = vld [vmem:[%s285_s26 + $0x8] sm:$0xff]  ;;  %s1313_s25 = sld [smem:[#allocation21_spill]]  ;;  %s419_s12 = scalar_lea.sflag [#allocation4], %s333_s29 }
  0xb3   : > { %v386_v18 = vsub.f32 %v368_v10, %v370_v1  ;;  %v387_v21 = vsub.f32 %v369_v16, %v371_v3  ;;  %v412_v26 = vld [vmem:[%s1198_s4] sm:$0xff]  ;;  %v413_v30 = vld [vmem:[%s1198_s4 + $0x8] sm:$0xff]  ;;  %s799_s11 = scalar_lea.vmem %s1221_s9, 256  ;;  %s931_s8 = smov [#allocation8]  }
  0xb4   : > { %v401_v9 = vadd.s32 128, %v400_v4  ;;  %v398_v12 = vadd.s32 %v397_v6, %v396_v5  ;;  %v403_v13 = vadd.s32 %v402_v7, %v400_v4  ;;  %p800_p9 = scmp.ne.s32.totalorder %s1221_s9, %s799_s11  ;;  %s803_s19 = sshll.u32 %s931_s8, 4  ;;  %s804_s19 = int_to_ptr.vmem [resolvable:$false] %s803_s19 }
  0xb5   : > { %s805_s30 = scalar_lea.vmem %s804_s19, 512  ;;  %p806_p8 = scmp.lt.s32.totalorder %s1221_s9, %s804_s19 }
  0xb6   : > { %v404_v19 = vadd.s32 %v402_v7, %v401_v9  ;;  %vm405_vm3 = vcmp.lt.s32.totalorder %v398_v12, 12  ;;  %vm406_vm4 = vcmp.lt.s32.totalorder %v403_v13, 300  ;;  %p807_p2 = scmp.lt.s32.totalorder %s805_s30, %s799_s11 }
  0xb7   : > { %vm408_vm9 = vmand %vm405_vm3, %vm406_vm4  ;;  %p1314_p11 = scmp.ne.s32.totalorder %s1312_s18, 0 }
  0xb8   : > { %vm407_vm8 = vcmp.lt.s32.totalorder %v404_v19, 300  ;;  %s1219_s3 = scalar_lea.hbm %s1313_s25, %s601_s5  ;;  %p808_p3 = por %p807_p2, %p806_p8 }
  0xb9   : > { %vm409_vm10 = vmand %vm405_vm3, %vm407_vm8  ;;  %p801_p4 = pnand %p800_p9, %p1314_p11 }
  0xbb   : > { %v712_v11 = vpop.eup %711  ;;  %p802_p5 = pneg %p801_p4 }
  0xbc   : > { %v375_v15 = vmul.f32 %v712_v11, %v372_v8  ;;  %v714_v17 = vpop.eup %713 }
  0xbd   : > { %v377_v20 = vmul.f32 %v714_v17, %v373_v14  ;;  %p809_p10 = pnand %p808_p3, %p802_p5 }
  0xbe   : > { %vm378_vm0 = vcmp.ne.f32.partialorder %v375_v15, %v375_v15  ;;  %vm380_vm1 = vcmp.eq.f32.partialorder %v375_v15, inf }
  0xbf   : > { %vm382_vm2 = vmor %vm378_vm0, %vm380_vm1  ;;  %vm379_vm5 = vcmp.ne.f32.partialorder %v377_v20, %v377_v20  ;;  %vm381_vm6 = vcmp.eq.f32.partialorder %v377_v20, inf }
  0xc0   : > { %v384_v22 = vsel %vm382_vm2, 0.0, %v375_v15  ;;  %vm383_vm7 = vmor %vm379_vm5, %vm381_vm6 }
  0xc1   : > { %v388_v23 = vmul.f32 %v386_v18, %v384_v22  ;;  %v385_v24 = vsel %vm383_vm7, 0.0, %v377_v20 }
  0xc2   : > { %v389_v27 = vmul.f32 %v387_v21, %v385_v24 }
  0xc3   : > { %v390_v25 = vand.u32 2147483647, %v388_v23 }
  0xc4   : > { %v391_v29 = vand.u32 2147483647, %v389_v27 }
  0xc5   : > { %v410_v28 = vsel %vm408_vm9, %v390_v25, 0.0 }
  0xc6   : > { %v414_v31 = vadd.f32 %v412_v26, %v410_v28  ;;  %v411_v32 = vsel %vm409_vm10, %v391_v29, 0.0 }
  0xc7   : > { %v415_v33 = vadd.f32 %v413_v30, %v411_v32 }
  0xc8   : > { %416 = vst [vmem:[%s1198_s4] sm:$0xff] %v414_v31 }
  0xc9   : > { %417 = vst [vmem:[%s1198_s4 + $0x8] sm:$0xff] %v415_v33 }
  0xca   : > { %812 = shalt.err (!%p809_p10)
}
  0xcb   : > { %s813_s28 = scalar_lea.hbm %s1219_s3, 256  ;;  %s817_s10 = scalar_lea.hbm %s1313_s25, 512 }
  0xcc   : > { %p814_p13 = scmp.ne.s32.totalorder %s1219_s3, %s813_s28  ;;  %p818_p1 = scmp.lt.u32.totalorder %s1219_s3, %s1313_s25 }
  0xcd   : > { %p819_p7 = scmp.lt.u32.totalorder %s817_s10, %s813_s28  ;;  %p821_p9 = scmp.lt.u32.totalorder %s813_s28, %s1219_s3 }
  0xce   : > { %p815_p0 = pnand %p814_p13, %p1314_p11 }
  0xcf   : > { %p820_p6 = por %p819_p7, %p818_p1 }
  0xd0   : > { %p816_p12 = pneg %p815_p0 }
  0xd1   : > { %p822_p4 = por %p821_p9, %p820_p6 }
  0xd3   : > { %p823_p5 = pnand %p822_p4, %p816_p12 }
  0xd5   : > { %826 = shalt.err (!%p823_p5)
}
  0xd6   : > { %615 = dma.vmem_to_hbm [thread:$0]  (%p1314_p11), %s1221_s9, 256, %s1219_s3, %s419_s12  }
  0xd7 PF: > { %s1315_s29 = sld [smem:[#allocation12_spill]]  ;;  %s1316_s15 = sld [smem:[#allocation20_spill]] }
  0xd8   : > { %p621_p8 = scmp.ge.s32.totalorder %s925_s22, 2 }
  0xdd   : > { %s445_s21 = sand.u32 1, %s1315_s29   ;;  %p1317_p2 = scmp.ne.s32.totalorder %s1316_s15, 0 }
  0xde   : > { %s446_s4 = scalar_lea.sflag [#allocation4], %s445_s21 }
  0xdf   : > { %p618_p3 = pnand %p621_p8, %p1317_p2 }
  0xe1   : > { %880 = dma.done.wait (!%p618_p3), %s446_s4, 256  }
  0xe2   : > { %882 = vsyncadd (!%p618_p3), %s446_s4, 4294967040  ;;  %s22_s22 = sadd.s32 1, %s925_s22   ;;  %s1318_s23 = sld [smem:[#allocation13_spill]] }
  0xe3   : > { %p19_p10 = scmp.ge.s32.totalorder %s22_s22, 6   ;;  %s1319_s14 = sld [smem:[#allocation18_spill]] }
  0xe4   : > { %s1320_s5 = sld [smem:[#allocation19_spill]]  ;;  %s1321_s19 = sld [smem:[#allocation14_spill]] }
  0xe5   : > { %s1322_s9 = sld [smem:[#allocation15_spill]]  ;;  %s1323_s21 = sld [smem:[#allocation16_spill]] }
  0xe6   : > { %s1324_s12 = smov %s889_s13  ;;  %s1326_s15 = smov %s901_s16 }
  0xe7   : > { %s1327_s16 = smov %s905_s17  ;;  %s1329_s18 = smov %s917_s20 }
  0xe8   : > { %s1325_s13 = smov %s1318_s23  ;;  %21 = sbr.rel (!%p19_p10) target bundleno = 13 (0xd), region = 105 }
  0xea   : > { %s1328_s17 = smov %s1320_s5 }
  0xeb   : > { %s1330_s20 = smov %s1322_s9 }
  0xef   :  { %451 = vsyncpa [#allocation3], 1 }
  0xf0   :  { %453 = vsyncpa [#allocation3 + $0x1], 1 }
  0xf1   :  { %454 = vsyncpa [#allocation6], 1 }
  0xf2   :  { %456 = vsyncpa [#allocation6 + $0x1], 1 }
  0xf3   :  { %457 = vsyncpa [#allocation4], 1 }
  0xf4   :  { %459 = vsyncpa [#allocation4 + $0x1], 1 }

</bundles_post_ra>
